<compile_context>
chip_gen: v7x
topology: tpu7x:2x2x1
jax: 0.10.0
libtpu: 0.0.40
codegen_flags: <defaults>
</compile_context>

<pallas_src>
import jax
import jax.numpy as jnp
from jax.experimental import pallas as pl
from jax.experimental.pallas import tpu as pltpu

_LANE = 128
_SUBLANE = 8


def _round_up(n, m):
    return ((n + m - 1) // m) * m


def _cdiv(a, b):
    return -(-a // b)


def _make_mlp_kernel(d_in, hidden, d_out, tile_rows, chunk_rows, activation):
    """Per-grid-step kernel.  Shapes seen by the kernel:
         x_ref : (d_in,  tile_rows, 128)  f32  VMEM   input tile (batch slab)
         w1_ref: (d_in*hidden,)           f32  SMEM   fc1 weight, idx d*hidden+h
         b1_ref: (hidden,)                f32  SMEM   fc1 bias
         w2_ref: (hidden*d_out,)          f32  SMEM   fc2 weight, idx h*d_out+o
         b2_ref: (d_out,)                 f32  SMEM   fc2 bias
         o_ref : (d_out, tile_rows, 128)  f32  VMEM   output tile (batch slab)
    """
    n_chunks = tile_rows // chunk_rows

    if activation == "relu":
        act = lambda z: jnp.maximum(z, 0.0)
    elif activation == "tanh":
        act = jnp.tanh
    elif activation == "elu":
        # expm1 matches torch.nn.ELU numerics near zero.
        act = lambda z: jnp.where(z > 0.0, z, jnp.expm1(z))
    else:
        raise ValueError("activation must be 'relu', 'tanh', or 'elu'")

    def kernel(x_ref, w1_ref, b1_ref, w2_ref, b2_ref, o_ref):
        # Hoist all (tiny) scalar weight reads out of the chunk loop.
        w1_v = [[w1_ref[d * hidden + h] for d in range(d_in)]
                for h in range(hidden)]
        b1_v = [b1_ref[h] for h in range(hidden)]
        w2_v = [[w2_ref[h * d_out + o] for o in range(d_out)]
                for h in range(hidden)]
        b2_v = [b2_ref[o] for o in range(d_out)]

        # Process the (tile_rows, 128) slab in small row-chunks: keeps live
        # vreg pressure at ~3 values per chunk while the DMA tile stays large.
        @pl.loop(0, n_chunks)
        def _(c):
            r0 = pl.multiple_of(c * chunk_rows, chunk_rows)
            xs = [x_ref[d, pl.ds(r0, chunk_rows), :] for d in range(d_in)]
            accs = [jnp.zeros((chunk_rows, _LANE), jnp.float32)
                    for _ in range(d_out)]
            for h in range(hidden):                       # static unrolled loop
                z = xs[0] * w1_v[h][0] + b1_v[h]          # VPU scalar*vector
                for d in range(1, d_in):
                    z = z + xs[d] * w1_v[h][d]
                a = act(z)                                # VPU / EUP
                for o in range(d_out):
                    accs[o] = accs[o] + a * w2_v[h][o]    # VPU accumulate
            for o in range(d_out):
                # Lane- and sublane-dense, unmasked store.
                o_ref[o, pl.ds(r0, chunk_rows), :] = accs[o] + b2_v[o]

    return kernel


def option_pricing_nn_forward(x, w1, b1, w2, b2, *, activation="relu",
                              tile_b=64 * 1024):
    """Forward pass.  x: (B, D_in); w1: (D_in, H); b1: (1, H) or (H,);
    w2: (H, D_out); b2: (1, D_out) or (D_out,).  Returns (B, D_out) f32.

    `tile_b` = max batch elements processed per grid step (default 64K, so
    small/medium batches run in a single grid step)."""
    x = jnp.asarray(x, jnp.float32)
    w1 = jnp.asarray(w1, jnp.float32)
    b1 = jnp.asarray(b1, jnp.float32)
    w2 = jnp.asarray(w2, jnp.float32)
    b2 = jnp.asarray(b2, jnp.float32)

    B, d_in = x.shape
    d_in_w, hidden = w1.shape
    assert d_in_w == d_in, "w1 must be (D_in, H)"
    hidden2, d_out = w2.shape
    assert hidden2 == hidden, "w2 must be (H, D_out)"

    # ----- batch tiling: dense (rows, 128) slab, large single-axis grid -----
    tile_b = int(min(max(tile_b, _SUBLANE * _LANE), 1 << 19))   # 1K .. 512K
    rows = max(1, _cdiv(B, _LANE))
    rows8 = _round_up(rows, _SUBLANE)                 # pad only to 8*128 = 1024
    max_tile_rows = _round_up(_cdiv(tile_b, _LANE), _SUBLANE)
    num_tiles = _cdiv(rows8, max_tile_rows)
    tile_rows = _round_up(_cdiv(rows8, num_tiles), _SUBLANE)
    rows_pad = tile_rows * num_tiles                  # <= rows8 + 8*num_tiles
    b_pad = rows_pad * _LANE

    # Largest row-chunk (multiple of 8, <= 64 rows) that divides tile_rows.
    chunk_rows = _SUBLANE
    for c in range(64, 0, -_SUBLANE):
        if tile_rows % c == 0:
            chunk_rows = c
            break

    # ----- wrapper layout (metadata-only for d_in == d_out == 1) -----
    x_k = x.T.reshape(d_in, B)                        # free when d_in == 1
    if b_pad != B:
        x_k = jnp.pad(x_k, ((0, 0), (0, b_pad - B)))  # <= 4 KiB of zero pad
    x_k = x_k.reshape(d_in, rows_pad, _LANE)

    w1_s = w1.reshape(-1)                             # idx = d * hidden + h
    b1_s = b1.reshape(-1)                             # (hidden,)
    w2_s = w2.reshape(-1)                             # idx = h * d_out + o
    b2_s = b2.reshape(-1)                             # (d_out,)

    kernel = _make_mlp_kernel(d_in, hidden, d_out, tile_rows, chunk_rows,
                              activation)

    flops = b_pad * hidden * (2 * d_in + 2 * d_out + 1)
    transcendentals = b_pad * hidden if activation in ("tanh", "elu") else 0
    bytes_accessed = 4 * b_pad * (d_in + d_out) + 4 * (
        w1_s.size + b1_s.size + w2_s.size + b2_s.size)

    smem = pl.BlockSpec(memory_space=pltpu.MemorySpace.SMEM)

    y_k = pl.pallas_call(
        kernel,
        out_shape=jax.ShapeDtypeStruct((d_out, rows_pad, _LANE), jnp.float32),
        grid=(num_tiles,),
        in_specs=[
            pl.BlockSpec((d_in, tile_rows, _LANE), lambda i: (0, i, 0)),  # x
            smem,   # w1 (scalars)
            smem,   # b1
            smem,   # w2
            smem,   # b2
        ],
        out_specs=pl.BlockSpec((d_out, tile_rows, _LANE), lambda i: (0, i, 0)),
        compiler_params=pltpu.CompilerParams(
            # Batch tiles are independent. On v7x, pltpu.CORE_PARALLEL /
            # pl.core_map would additionally shard tiles across the 2
            # TensorCores; plain "parallel" is kept for v5e/v6e/v7x portability.
            dimension_semantics=("parallel",)),
        cost_estimate=pl.CostEstimate(flops=flops,
                                      transcendentals=transcendentals,
                                      bytes_accessed=bytes_accessed),
    )(x_k, w1_s, b1_s, w2_s, b2_s)

    # Back to the torch convention (B, D_out); drop batch padding.
    return y_k.reshape(d_out, b_pad)[:, :B].T


def init_params(key, input_dim=1, hidden_dim=30, output_dim=1):
    """Deterministic synthetic params; weights stored as (in, out), i.e.
    transposed vs. torch's nn.Linear (out, in)."""
    k1, k2, k3, k4 = jax.random.split(key, 4)
    w1 = jax.random.normal(k1, (input_dim, hidden_dim), jnp.float32) / jnp.sqrt(input_dim)
    b1 = jax.random.normal(k2, (1, hidden_dim), jnp.float32) * 0.01
    w2 = jax.random.normal(k3, (hidden_dim, output_dim), jnp.float32) / jnp.sqrt(hidden_dim)
    b2 = jax.random.normal(k4, (1, output_dim), jnp.float32) * 0.01
    return w1, b1, w2, b2


def reference_forward(x, w1, b1, w2, b2, activation="relu"):
    """Pure-JAX reference matching torch semantics (Linear -> act -> Linear)."""
    z = x @ w1 + b1.reshape(1, -1)
    if activation == "relu":
        h = jnp.maximum(z, 0.0)
    elif activation == "tanh":
        h = jnp.tanh(z)
    else:  # elu
        h = jnp.where(z > 0.0, z, jnp.expm1(z))
    return h @ w2 + b2.reshape(1, -1)


if __name__ == "__main__":
    key = jax.random.PRNGKey(0)
    k_p, k_x1, k_x2, k_x3 = jax.random.split(key, 4)

    input_dim, hidden_dim, output_dim = 1, 30, 1
    w1, b1, w2, b2 = init_params(k_p, input_dim, hidden_dim, output_dim)

    # Case 1: tiny batch (original module usage) -> 1 grid step, 1 chunk.
    x_small = jax.random.uniform(k_x1, (8, input_dim), jnp.float32,
                                 minval=0.5, maxval=1.5)
    y_small = jax.block_until_ready(
        option_pricing_nn_forward(x_small, w1, b1, w2, b2))
    assert y_small.shape == (8, output_dim)
    assert jnp.allclose(y_small, reference_forward(x_small, w1, b1, w2, b2),
                        atol=1e-5, rtol=1e-5), "relu small-batch mismatch"

    # tanh / elu activation paths on the tiny batch.
    for act_name in ("tanh", "elu"):
        y_act = jax.block_until_ready(
            option_pricing_nn_forward(x_small, w1, b1, w2, b2,
                                      activation=act_name))
        y_act_ref = reference_forward(x_small, w1, b1, w2, b2, act_name)
        assert jnp.allclose(y_act, y_act_ref, atol=1e-4, rtol=1e-4), \
            f"{act_name} small-batch mismatch"

    # Case 2: medium batch -> single grid step, multiple in-kernel chunks.
    x_med = jax.random.uniform(k_x2, (2500, input_dim), jnp.float32,
                               minval=0.5, maxval=1.5)
    y_med = jax.block_until_ready(
        option_pricing_nn_forward(x_med, w1, b1, w2, b2))
    assert y_med.shape == (2500, output_dim)
    assert jnp.allclose(y_med, reference_forward(x_med, w1, b1, w2, b2),
                        atol=1e-5, rtol=1e-5), "relu medium-batch mismatch"

    # Case 3: large batch -> multiple pipelined (parallel) grid steps.
    x_big = jax.random.uniform(k_x3, (200_000, input_dim), jnp.float32,
                               minval=0.5, maxval=1.5)
    y_big = jax.block_until_ready(
        option_pricing_nn_forward(x_big, w1, b1, w2, b2))
    assert y_big.shape == (200_000, output_dim)
    assert jnp.allclose(y_big, reference_forward(x_big, w1, b1, w2, b2),
                        atol=1e-5, rtol=1e-5), "relu large-batch mismatch"

    print("KERNEL_OK")
</pallas_src>

<mosaic_0001>
module attributes {stable_mosaic.version = 11 : i64} {
  func.func @kernel(%arg0: i32, %arg1: memref<1x8x128xf32, #tpu.memory_space<vmem>>, %arg2: memref<30xf32, #tpu.memory_space<smem>>, %arg3: memref<30xf32, #tpu.memory_space<smem>>, %arg4: memref<30xf32, #tpu.memory_space<smem>>, %arg5: memref<1xf32, #tpu.memory_space<smem>>, %arg6: memref<1x8x128xf32, #tpu.memory_space<vmem>>) attributes {dimension_semantics = [#tpu.dimension_semantics<parallel>], iteration_bounds = array<i64: 1>, scalar_prefetch = 0 : i64, scratch_operands = 0 : i64, tpu.core_type = #tpu.core_type<tc>, window_params = [{transform_indices = @transform_0, window_bounds = array<i64: 1, 8, 128>}, {transform_indices = @transform_1, window_bounds = array<i64: 30>}, {transform_indices = @transform_2, window_bounds = array<i64: 30>}, {transform_indices = @transform_3, window_bounds = array<i64: 30>}, {transform_indices = @transform_4, window_bounds = array<i64: 1>}, {transform_indices = @transform_5, window_bounds = array<i64: 1, 8, 128>}]} {
    %c0 = arith.constant 0 : index
    %0 = memref.load %arg2[%c0] : memref<30xf32, #tpu.memory_space<smem>>
    %c1 = arith.constant 1 : index
    %1 = memref.load %arg2[%c1] : memref<30xf32, #tpu.memory_space<smem>>
    %c2 = arith.constant 2 : index
    %2 = memref.load %arg2[%c2] : memref<30xf32, #tpu.memory_space<smem>>
    %c3 = arith.constant 3 : index
    %3 = memref.load %arg2[%c3] : memref<30xf32, #tpu.memory_space<smem>>
    %c4 = arith.constant 4 : index
    %4 = memref.load %arg2[%c4] : memref<30xf32, #tpu.memory_space<smem>>
    %c5 = arith.constant 5 : index
    %5 = memref.load %arg2[%c5] : memref<30xf32, #tpu.memory_space<smem>>
    %c6 = arith.constant 6 : index
    %6 = memref.load %arg2[%c6] : memref<30xf32, #tpu.memory_space<smem>>
    %c7 = arith.constant 7 : index
    %7 = memref.load %arg2[%c7] : memref<30xf32, #tpu.memory_space<smem>>
    %c8 = arith.constant 8 : index
    %8 = memref.load %arg2[%c8] : memref<30xf32, #tpu.memory_space<smem>>
    %c9 = arith.constant 9 : index
    %9 = memref.load %arg2[%c9] : memref<30xf32, #tpu.memory_space<smem>>
    %c10 = arith.constant 10 : index
    %10 = memref.load %arg2[%c10] : memref<30xf32, #tpu.memory_space<smem>>
    %c11 = arith.constant 11 : index
    %11 = memref.load %arg2[%c11] : memref<30xf32, #tpu.memory_space<smem>>
    %c12 = arith.constant 12 : index
    %12 = memref.load %arg2[%c12] : memref<30xf32, #tpu.memory_space<smem>>
    %c13 = arith.constant 13 : index
    %13 = memref.load %arg2[%c13] : memref<30xf32, #tpu.memory_space<smem>>
    %c14 = arith.constant 14 : index
    %14 = memref.load %arg2[%c14] : memref<30xf32, #tpu.memory_space<smem>>
    %c15 = arith.constant 15 : index
    %15 = memref.load %arg2[%c15] : memref<30xf32, #tpu.memory_space<smem>>
    %c16 = arith.constant 16 : index
    %16 = memref.load %arg2[%c16] : memref<30xf32, #tpu.memory_space<smem>>
    %c17 = arith.constant 17 : index
    %17 = memref.load %arg2[%c17] : memref<30xf32, #tpu.memory_space<smem>>
    %c18 = arith.constant 18 : index
    %18 = memref.load %arg2[%c18] : memref<30xf32, #tpu.memory_space<smem>>
    %c19 = arith.constant 19 : index
    %19 = memref.load %arg2[%c19] : memref<30xf32, #tpu.memory_space<smem>>
    %c20 = arith.constant 20 : index
    %20 = memref.load %arg2[%c20] : memref<30xf32, #tpu.memory_space<smem>>
    %c21 = arith.constant 21 : index
    %21 = memref.load %arg2[%c21] : memref<30xf32, #tpu.memory_space<smem>>
    %c22 = arith.constant 22 : index
    %22 = memref.load %arg2[%c22] : memref<30xf32, #tpu.memory_space<smem>>
    %c23 = arith.constant 23 : index
    %23 = memref.load %arg2[%c23] : memref<30xf32, #tpu.memory_space<smem>>
    %c24 = arith.constant 24 : index
    %24 = memref.load %arg2[%c24] : memref<30xf32, #tpu.memory_space<smem>>
    %c25 = arith.constant 25 : index
    %25 = memref.load %arg2[%c25] : memref<30xf32, #tpu.memory_space<smem>>
    %c26 = arith.constant 26 : index
    %26 = memref.load %arg2[%c26] : memref<30xf32, #tpu.memory_space<smem>>
    %c27 = arith.constant 27 : index
    %27 = memref.load %arg2[%c27] : memref<30xf32, #tpu.memory_space<smem>>
    %c28 = arith.constant 28 : index
    %28 = memref.load %arg2[%c28] : memref<30xf32, #tpu.memory_space<smem>>
    %c29 = arith.constant 29 : index
    %29 = memref.load %arg2[%c29] : memref<30xf32, #tpu.memory_space<smem>>
    %c0_0 = arith.constant 0 : index
    %30 = memref.load %arg3[%c0_0] : memref<30xf32, #tpu.memory_space<smem>>
    %c1_1 = arith.constant 1 : index
    %31 = memref.load %arg3[%c1_1] : memref<30xf32, #tpu.memory_space<smem>>
    %c2_2 = arith.constant 2 : index
    %32 = memref.load %arg3[%c2_2] : memref<30xf32, #tpu.memory_space<smem>>
    %c3_3 = arith.constant 3 : index
    %33 = memref.load %arg3[%c3_3] : memref<30xf32, #tpu.memory_space<smem>>
    %c4_4 = arith.constant 4 : index
    %34 = memref.load %arg3[%c4_4] : memref<30xf32, #tpu.memory_space<smem>>
    %c5_5 = arith.constant 5 : index
    %35 = memref.load %arg3[%c5_5] : memref<30xf32, #tpu.memory_space<smem>>
    %c6_6 = arith.constant 6 : index
    %36 = memref.load %arg3[%c6_6] : memref<30xf32, #tpu.memory_space<smem>>
    %c7_7 = arith.constant 7 : index
    %37 = memref.load %arg3[%c7_7] : memref<30xf32, #tpu.memory_space<smem>>
    %c8_8 = arith.constant 8 : index
    %38 = memref.load %arg3[%c8_8] : memref<30xf32, #tpu.memory_space<smem>>
    %c9_9 = arith.constant 9 : index
    %39 = memref.load %arg3[%c9_9] : memref<30xf32, #tpu.memory_space<smem>>
    %c10_10 = arith.constant 10 : index
    %40 = memref.load %arg3[%c10_10] : memref<30xf32, #tpu.memory_space<smem>>
    %c11_11 = arith.constant 11 : index
    %41 = memref.load %arg3[%c11_11] : memref<30xf32, #tpu.memory_space<smem>>
    %c12_12 = arith.constant 12 : index
    %42 = memref.load %arg3[%c12_12] : memref<30xf32, #tpu.memory_space<smem>>
    %c13_13 = arith.constant 13 : index
    %43 = memref.load %arg3[%c13_13] : memref<30xf32, #tpu.memory_space<smem>>
    %c14_14 = arith.constant 14 : index
    %44 = memref.load %arg3[%c14_14] : memref<30xf32, #tpu.memory_space<smem>>
    %c15_15 = arith.constant 15 : index
    %45 = memref.load %arg3[%c15_15] : memref<30xf32, #tpu.memory_space<smem>>
    %c16_16 = arith.constant 16 : index
    %46 = memref.load %arg3[%c16_16] : memref<30xf32, #tpu.memory_space<smem>>
    %c17_17 = arith.constant 17 : index
    %47 = memref.load %arg3[%c17_17] : memref<30xf32, #tpu.memory_space<smem>>
    %c18_18 = arith.constant 18 : index
    %48 = memref.load %arg3[%c18_18] : memref<30xf32, #tpu.memory_space<smem>>
    %c19_19 = arith.constant 19 : index
    %49 = memref.load %arg3[%c19_19] : memref<30xf32, #tpu.memory_space<smem>>
    %c20_20 = arith.constant 20 : index
    %50 = memref.load %arg3[%c20_20] : memref<30xf32, #tpu.memory_space<smem>>
    %c21_21 = arith.constant 21 : index
    %51 = memref.load %arg3[%c21_21] : memref<30xf32, #tpu.memory_space<smem>>
    %c22_22 = arith.constant 22 : index
    %52 = memref.load %arg3[%c22_22] : memref<30xf32, #tpu.memory_space<smem>>
    %c23_23 = arith.constant 23 : index
    %53 = memref.load %arg3[%c23_23] : memref<30xf32, #tpu.memory_space<smem>>
    %c24_24 = arith.constant 24 : index
    %54 = memref.load %arg3[%c24_24] : memref<30xf32, #tpu.memory_space<smem>>
    %c25_25 = arith.constant 25 : index
    %55 = memref.load %arg3[%c25_25] : memref<30xf32, #tpu.memory_space<smem>>
    %c26_26 = arith.constant 26 : index
    %56 = memref.load %arg3[%c26_26] : memref<30xf32, #tpu.memory_space<smem>>
    %c27_27 = arith.constant 27 : index
    %57 = memref.load %arg3[%c27_27] : memref<30xf32, #tpu.memory_space<smem>>
    %c28_28 = arith.constant 28 : index
    %58 = memref.load %arg3[%c28_28] : memref<30xf32, #tpu.memory_space<smem>>
    %c29_29 = arith.constant 29 : index
    %59 = memref.load %arg3[%c29_29] : memref<30xf32, #tpu.memory_space<smem>>
    %c0_30 = arith.constant 0 : index
    %60 = memref.load %arg4[%c0_30] : memref<30xf32, #tpu.memory_space<smem>>
    %c1_31 = arith.constant 1 : index
    %61 = memref.load %arg4[%c1_31] : memref<30xf32, #tpu.memory_space<smem>>
    %c2_32 = arith.constant 2 : index
    %62 = memref.load %arg4[%c2_32] : memref<30xf32, #tpu.memory_space<smem>>
    %c3_33 = arith.constant 3 : index
    %63 = memref.load %arg4[%c3_33] : memref<30xf32, #tpu.memory_space<smem>>
    %c4_34 = arith.constant 4 : index
    %64 = memref.load %arg4[%c4_34] : memref<30xf32, #tpu.memory_space<smem>>
    %c5_35 = arith.constant 5 : index
    %65 = memref.load %arg4[%c5_35] : memref<30xf32, #tpu.memory_space<smem>>
    %c6_36 = arith.constant 6 : index
    %66 = memref.load %arg4[%c6_36] : memref<30xf32, #tpu.memory_space<smem>>
    %c7_37 = arith.constant 7 : index
    %67 = memref.load %arg4[%c7_37] : memref<30xf32, #tpu.memory_space<smem>>
    %c8_38 = arith.constant 8 : index
    %68 = memref.load %arg4[%c8_38] : memref<30xf32, #tpu.memory_space<smem>>
    %c9_39 = arith.constant 9 : index
    %69 = memref.load %arg4[%c9_39] : memref<30xf32, #tpu.memory_space<smem>>
    %c10_40 = arith.constant 10 : index
    %70 = memref.load %arg4[%c10_40] : memref<30xf32, #tpu.memory_space<smem>>
    %c11_41 = arith.constant 11 : index
    %71 = memref.load %arg4[%c11_41] : memref<30xf32, #tpu.memory_space<smem>>
    %c12_42 = arith.constant 12 : index
    %72 = memref.load %arg4[%c12_42] : memref<30xf32, #tpu.memory_space<smem>>
    %c13_43 = arith.constant 13 : index
    %73 = memref.load %arg4[%c13_43] : memref<30xf32, #tpu.memory_space<smem>>
    %c14_44 = arith.constant 14 : index
    %74 = memref.load %arg4[%c14_44] : memref<30xf32, #tpu.memory_space<smem>>
    %c15_45 = arith.constant 15 : index
    %75 = memref.load %arg4[%c15_45] : memref<30xf32, #tpu.memory_space<smem>>
    %c16_46 = arith.constant 16 : index
    %76 = memref.load %arg4[%c16_46] : memref<30xf32, #tpu.memory_space<smem>>
    %c17_47 = arith.constant 17 : index
    %77 = memref.load %arg4[%c17_47] : memref<30xf32, #tpu.memory_space<smem>>
    %c18_48 = arith.constant 18 : index
    %78 = memref.load %arg4[%c18_48] : memref<30xf32, #tpu.memory_space<smem>>
    %c19_49 = arith.constant 19 : index
    %79 = memref.load %arg4[%c19_49] : memref<30xf32, #tpu.memory_space<smem>>
    %c20_50 = arith.constant 20 : index
    %80 = memref.load %arg4[%c20_50] : memref<30xf32, #tpu.memory_space<smem>>
    %c21_51 = arith.constant 21 : index
    %81 = memref.load %arg4[%c21_51] : memref<30xf32, #tpu.memory_space<smem>>
    %c22_52 = arith.constant 22 : index
    %82 = memref.load %arg4[%c22_52] : memref<30xf32, #tpu.memory_space<smem>>
    %c23_53 = arith.constant 23 : index
    %83 = memref.load %arg4[%c23_53] : memref<30xf32, #tpu.memory_space<smem>>
    %c24_54 = arith.constant 24 : index
    %84 = memref.load %arg4[%c24_54] : memref<30xf32, #tpu.memory_space<smem>>
    %c25_55 = arith.constant 25 : index
    %85 = memref.load %arg4[%c25_55] : memref<30xf32, #tpu.memory_space<smem>>
    %c26_56 = arith.constant 26 : index
    %86 = memref.load %arg4[%c26_56] : memref<30xf32, #tpu.memory_space<smem>>
    %c27_57 = arith.constant 27 : index
    %87 = memref.load %arg4[%c27_57] : memref<30xf32, #tpu.memory_space<smem>>
    %c28_58 = arith.constant 28 : index
    %88 = memref.load %arg4[%c28_58] : memref<30xf32, #tpu.memory_space<smem>>
    %c29_59 = arith.constant 29 : index
    %89 = memref.load %arg4[%c29_59] : memref<30xf32, #tpu.memory_space<smem>>
    %c0_60 = arith.constant 0 : index
    %90 = memref.load %arg5[%c0_60] : memref<1xf32, #tpu.memory_space<smem>>
    %c0_i32 = arith.constant 0 : i32
    %c1_i32 = arith.constant 1 : i32
    %91 = arith.muli %c0_i32, %c1_i32 : i32
    %c0_i32_61 = arith.constant 0 : i32
    %92 = arith.addi %c0_i32_61, %91 : i32
    %c8_i32 = arith.constant 8 : i32
    %93 = arith.muli %92, %c8_i32 : i32
    %94 = tpu.assume_multiple %93, 8 : i32
    %c0_62 = arith.constant 0 : index
    %95 = arith.index_cast %94 : i32 to index
    %c0_63 = arith.constant 0 : index
    %96 = vector.load %arg1[%c0_62, %95, %c0_63] : memref<1x8x128xf32, #tpu.memory_space<vmem>>, vector<1x8x128xf32>
    %97 = vector.shape_cast %96 : vector<1x8x128xf32> to vector<8x128xf32>
    %cst = arith.constant 0.000000e+00 : f32
    %98 = vector.broadcast %cst : f32 to vector<8x128xf32>
    %99 = vector.broadcast %0 : f32 to vector<8x128xf32>
    %100 = arith.mulf %97, %99 : vector<8x128xf32>
    %101 = vector.broadcast %30 : f32 to vector<8x128xf32>
    %102 = arith.addf %100, %101 : vector<8x128xf32>
    %cst_64 = arith.constant 0.000000e+00 : f32
    %103 = vector.broadcast %cst_64 : f32 to vector<8x128xf32>
    %104 = arith.maximumf %102, %103 : vector<8x128xf32>
    %105 = vector.broadcast %60 : f32 to vector<8x128xf32>
    %106 = arith.mulf %104, %105 : vector<8x128xf32>
    %107 = arith.addf %98, %106 : vector<8x128xf32>
    %108 = vector.broadcast %1 : f32 to vector<8x128xf32>
    %109 = arith.mulf %97, %108 : vector<8x128xf32>
    %110 = vector.broadcast %31 : f32 to vector<8x128xf32>
    %111 = arith.addf %109, %110 : vector<8x128xf32>
    %cst_65 = arith.constant 0.000000e+00 : f32
    %112 = vector.broadcast %cst_65 : f32 to vector<8x128xf32>
    %113 = arith.maximumf %111, %112 : vector<8x128xf32>
    %114 = vector.broadcast %61 : f32 to vector<8x128xf32>
    %115 = arith.mulf %113, %114 : vector<8x128xf32>
    %116 = arith.addf %107, %115 : vector<8x128xf32>
    %117 = vector.broadcast %2 : f32 to vector<8x128xf32>
    %118 = arith.mulf %97, %117 : vector<8x128xf32>
    %119 = vector.broadcast %32 : f32 to vector<8x128xf32>
    %120 = arith.addf %118, %119 : vector<8x128xf32>
    %cst_66 = arith.constant 0.000000e+00 : f32
    %121 = vector.broadcast %cst_66 : f32 to vector<8x128xf32>
    %122 = arith.maximumf %120, %121 : vector<8x128xf32>
    %123 = vector.broadcast %62 : f32 to vector<8x128xf32>
    %124 = arith.mulf %122, %123 : vector<8x128xf32>
    %125 = arith.addf %116, %124 : vector<8x128xf32>
    %126 = vector.broadcast %3 : f32 to vector<8x128xf32>
    %127 = arith.mulf %97, %126 : vector<8x128xf32>
    %128 = vector.broadcast %33 : f32 to vector<8x128xf32>
    %129 = arith.addf %127, %128 : vector<8x128xf32>
    %cst_67 = arith.constant 0.000000e+00 : f32
    %130 = vector.broadcast %cst_67 : f32 to vector<8x128xf32>
    %131 = arith.maximumf %129, %130 : vector<8x128xf32>
    %132 = vector.broadcast %63 : f32 to vector<8x128xf32>
    %133 = arith.mulf %131, %132 : vector<8x128xf32>
    %134 = arith.addf %125, %133 : vector<8x128xf32>
    %135 = vector.broadcast %4 : f32 to vector<8x128xf32>
    %136 = arith.mulf %97, %135 : vector<8x128xf32>
    %137 = vector.broadcast %34 : f32 to vector<8x128xf32>
    %138 = arith.addf %136, %137 : vector<8x128xf32>
    %cst_68 = arith.constant 0.000000e+00 : f32
    %139 = vector.broadcast %cst_68 : f32 to vector<8x128xf32>
    %140 = arith.maximumf %138, %139 : vector<8x128xf32>
    %141 = vector.broadcast %64 : f32 to vector<8x128xf32>
    %142 = arith.mulf %140, %141 : vector<8x128xf32>
    %143 = arith.addf %134, %142 : vector<8x128xf32>
    %144 = vector.broadcast %5 : f32 to vector<8x128xf32>
    %145 = arith.mulf %97, %144 : vector<8x128xf32>
    %146 = vector.broadcast %35 : f32 to vector<8x128xf32>
    %147 = arith.addf %145, %146 : vector<8x128xf32>
    %cst_69 = arith.constant 0.000000e+00 : f32
    %148 = vector.broadcast %cst_69 : f32 to vector<8x128xf32>
    %149 = arith.maximumf %147, %148 : vector<8x128xf32>
    %150 = vector.broadcast %65 : f32 to vector<8x128xf32>
    %151 = arith.mulf %149, %150 : vector<8x128xf32>
    %152 = arith.addf %143, %151 : vector<8x128xf32>
    %153 = vector.broadcast %6 : f32 to vector<8x128xf32>
    %154 = arith.mulf %97, %153 : vector<8x128xf32>
    %155 = vector.broadcast %36 : f32 to vector<8x128xf32>
    %156 = arith.addf %154, %155 : vector<8x128xf32>
    %cst_70 = arith.constant 0.000000e+00 : f32
    %157 = vector.broadcast %cst_70 : f32 to vector<8x128xf32>
    %158 = arith.maximumf %156, %157 : vector<8x128xf32>
    %159 = vector.broadcast %66 : f32 to vector<8x128xf32>
    %160 = arith.mulf %158, %159 : vector<8x128xf32>
    %161 = arith.addf %152, %160 : vector<8x128xf32>
    %162 = vector.broadcast %7 : f32 to vector<8x128xf32>
    %163 = arith.mulf %97, %162 : vector<8x128xf32>
    %164 = vector.broadcast %37 : f32 to vector<8x128xf32>
    %165 = arith.addf %163, %164 : vector<8x128xf32>
    %cst_71 = arith.constant 0.000000e+00 : f32
    %166 = vector.broadcast %cst_71 : f32 to vector<8x128xf32>
    %167 = arith.maximumf %165, %166 : vector<8x128xf32>
    %168 = vector.broadcast %67 : f32 to vector<8x128xf32>
    %169 = arith.mulf %167, %168 : vector<8x128xf32>
    %170 = arith.addf %161, %169 : vector<8x128xf32>
    %171 = vector.broadcast %8 : f32 to vector<8x128xf32>
    %172 = arith.mulf %97, %171 : vector<8x128xf32>
    %173 = vector.broadcast %38 : f32 to vector<8x128xf32>
    %174 = arith.addf %172, %173 : vector<8x128xf32>
    %cst_72 = arith.constant 0.000000e+00 : f32
    %175 = vector.broadcast %cst_72 : f32 to vector<8x128xf32>
    %176 = arith.maximumf %174, %175 : vector<8x128xf32>
    %177 = vector.broadcast %68 : f32 to vector<8x128xf32>
    %178 = arith.mulf %176, %177 : vector<8x128xf32>
    %179 = arith.addf %170, %178 : vector<8x128xf32>
    %180 = vector.broadcast %9 : f32 to vector<8x128xf32>
    %181 = arith.mulf %97, %180 : vector<8x128xf32>
    %182 = vector.broadcast %39 : f32 to vector<8x128xf32>
    %183 = arith.addf %181, %182 : vector<8x128xf32>
    %cst_73 = arith.constant 0.000000e+00 : f32
    %184 = vector.broadcast %cst_73 : f32 to vector<8x128xf32>
    %185 = arith.maximumf %183, %184 : vector<8x128xf32>
    %186 = vector.broadcast %69 : f32 to vector<8x128xf32>
    %187 = arith.mulf %185, %186 : vector<8x128xf32>
    %188 = arith.addf %179, %187 : vector<8x128xf32>
    %189 = vector.broadcast %10 : f32 to vector<8x128xf32>
    %190 = arith.mulf %97, %189 : vector<8x128xf32>
    %191 = vector.broadcast %40 : f32 to vector<8x128xf32>
    %192 = arith.addf %190, %191 : vector<8x128xf32>
    %cst_74 = arith.constant 0.000000e+00 : f32
    %193 = vector.broadcast %cst_74 : f32 to vector<8x128xf32>
    %194 = arith.maximumf %192, %193 : vector<8x128xf32>
    %195 = vector.broadcast %70 : f32 to vector<8x128xf32>
    %196 = arith.mulf %194, %195 : vector<8x128xf32>
    %197 = arith.addf %188, %196 : vector<8x128xf32>
    %198 = vector.broadcast %11 : f32 to vector<8x128xf32>
    %199 = arith.mulf %97, %198 : vector<8x128xf32>
    %200 = vector.broadcast %41 : f32 to vector<8x128xf32>
    %201 = arith.addf %199, %200 : vector<8x128xf32>
    %cst_75 = arith.constant 0.000000e+00 : f32
    %202 = vector.broadcast %cst_75 : f32 to vector<8x128xf32>
    %203 = arith.maximumf %201, %202 : vector<8x128xf32>
    %204 = vector.broadcast %71 : f32 to vector<8x128xf32>
    %205 = arith.mulf %203, %204 : vector<8x128xf32>
    %206 = arith.addf %197, %205 : vector<8x128xf32>
    %207 = vector.broadcast %12 : f32 to vector<8x128xf32>
    %208 = arith.mulf %97, %207 : vector<8x128xf32>
    %209 = vector.broadcast %42 : f32 to vector<8x128xf32>
    %210 = arith.addf %208, %209 : vector<8x128xf32>
    %cst_76 = arith.constant 0.000000e+00 : f32
    %211 = vector.broadcast %cst_76 : f32 to vector<8x128xf32>
    %212 = arith.maximumf %210, %211 : vector<8x128xf32>
    %213 = vector.broadcast %72 : f32 to vector<8x128xf32>
    %214 = arith.mulf %212, %213 : vector<8x128xf32>
    %215 = arith.addf %206, %214 : vector<8x128xf32>
    %216 = vector.broadcast %13 : f32 to vector<8x128xf32>
    %217 = arith.mulf %97, %216 : vector<8x128xf32>
    %218 = vector.broadcast %43 : f32 to vector<8x128xf32>
    %219 = arith.addf %217, %218 : vector<8x128xf32>
    %cst_77 = arith.constant 0.000000e+00 : f32
    %220 = vector.broadcast %cst_77 : f32 to vector<8x128xf32>
    %221 = arith.maximumf %219, %220 : vector<8x128xf32>
    %222 = vector.broadcast %73 : f32 to vector<8x128xf32>
    %223 = arith.mulf %221, %222 : vector<8x128xf32>
    %224 = arith.addf %215, %223 : vector<8x128xf32>
    %225 = vector.broadcast %14 : f32 to vector<8x128xf32>
    %226 = arith.mulf %97, %225 : vector<8x128xf32>
    %227 = vector.broadcast %44 : f32 to vector<8x128xf32>
    %228 = arith.addf %226, %227 : vector<8x128xf32>
    %cst_78 = arith.constant 0.000000e+00 : f32
    %229 = vector.broadcast %cst_78 : f32 to vector<8x128xf32>
    %230 = arith.maximumf %228, %229 : vector<8x128xf32>
    %231 = vector.broadcast %74 : f32 to vector<8x128xf32>
    %232 = arith.mulf %230, %231 : vector<8x128xf32>
    %233 = arith.addf %224, %232 : vector<8x128xf32>
    %234 = vector.broadcast %15 : f32 to vector<8x128xf32>
    %235 = arith.mulf %97, %234 : vector<8x128xf32>
    %236 = vector.broadcast %45 : f32 to vector<8x128xf32>
    %237 = arith.addf %235, %236 : vector<8x128xf32>
    %cst_79 = arith.constant 0.000000e+00 : f32
    %238 = vector.broadcast %cst_79 : f32 to vector<8x128xf32>
    %239 = arith.maximumf %237, %238 : vector<8x128xf32>
    %240 = vector.broadcast %75 : f32 to vector<8x128xf32>
    %241 = arith.mulf %239, %240 : vector<8x128xf32>
    %242 = arith.addf %233, %241 : vector<8x128xf32>
    %243 = vector.broadcast %16 : f32 to vector<8x128xf32>
    %244 = arith.mulf %97, %243 : vector<8x128xf32>
    %245 = vector.broadcast %46 : f32 to vector<8x128xf32>
    %246 = arith.addf %244, %245 : vector<8x128xf32>
    %cst_80 = arith.constant 0.000000e+00 : f32
    %247 = vector.broadcast %cst_80 : f32 to vector<8x128xf32>
    %248 = arith.maximumf %246, %247 : vector<8x128xf32>
    %249 = vector.broadcast %76 : f32 to vector<8x128xf32>
    %250 = arith.mulf %248, %249 : vector<8x128xf32>
    %251 = arith.addf %242, %250 : vector<8x128xf32>
    %252 = vector.broadcast %17 : f32 to vector<8x128xf32>
    %253 = arith.mulf %97, %252 : vector<8x128xf32>
    %254 = vector.broadcast %47 : f32 to vector<8x128xf32>
    %255 = arith.addf %253, %254 : vector<8x128xf32>
    %cst_81 = arith.constant 0.000000e+00 : f32
    %256 = vector.broadcast %cst_81 : f32 to vector<8x128xf32>
    %257 = arith.maximumf %255, %256 : vector<8x128xf32>
    %258 = vector.broadcast %77 : f32 to vector<8x128xf32>
    %259 = arith.mulf %257, %258 : vector<8x128xf32>
    %260 = arith.addf %251, %259 : vector<8x128xf32>
    %261 = vector.broadcast %18 : f32 to vector<8x128xf32>
    %262 = arith.mulf %97, %261 : vector<8x128xf32>
    %263 = vector.broadcast %48 : f32 to vector<8x128xf32>
    %264 = arith.addf %262, %263 : vector<8x128xf32>
    %cst_82 = arith.constant 0.000000e+00 : f32
    %265 = vector.broadcast %cst_82 : f32 to vector<8x128xf32>
    %266 = arith.maximumf %264, %265 : vector<8x128xf32>
    %267 = vector.broadcast %78 : f32 to vector<8x128xf32>
    %268 = arith.mulf %266, %267 : vector<8x128xf32>
    %269 = arith.addf %260, %268 : vector<8x128xf32>
    %270 = vector.broadcast %19 : f32 to vector<8x128xf32>
    %271 = arith.mulf %97, %270 : vector<8x128xf32>
    %272 = vector.broadcast %49 : f32 to vector<8x128xf32>
    %273 = arith.addf %271, %272 : vector<8x128xf32>
    %cst_83 = arith.constant 0.000000e+00 : f32
    %274 = vector.broadcast %cst_83 : f32 to vector<8x128xf32>
    %275 = arith.maximumf %273, %274 : vector<8x128xf32>
    %276 = vector.broadcast %79 : f32 to vector<8x128xf32>
    %277 = arith.mulf %275, %276 : vector<8x128xf32>
    %278 = arith.addf %269, %277 : vector<8x128xf32>
    %279 = vector.broadcast %20 : f32 to vector<8x128xf32>
    %280 = arith.mulf %97, %279 : vector<8x128xf32>
    %281 = vector.broadcast %50 : f32 to vector<8x128xf32>
    %282 = arith.addf %280, %281 : vector<8x128xf32>
    %cst_84 = arith.constant 0.000000e+00 : f32
    %283 = vector.broadcast %cst_84 : f32 to vector<8x128xf32>
    %284 = arith.maximumf %282, %283 : vector<8x128xf32>
    %285 = vector.broadcast %80 : f32 to vector<8x128xf32>
    %286 = arith.mulf %284, %285 : vector<8x128xf32>
    %287 = arith.addf %278, %286 : vector<8x128xf32>
    %288 = vector.broadcast %21 : f32 to vector<8x128xf32>
    %289 = arith.mulf %97, %288 : vector<8x128xf32>
    %290 = vector.broadcast %51 : f32 to vector<8x128xf32>
    %291 = arith.addf %289, %290 : vector<8x128xf32>
    %cst_85 = arith.constant 0.000000e+00 : f32
    %292 = vector.broadcast %cst_85 : f32 to vector<8x128xf32>
    %293 = arith.maximumf %291, %292 : vector<8x128xf32>
    %294 = vector.broadcast %81 : f32 to vector<8x128xf32>
    %295 = arith.mulf %293, %294 : vector<8x128xf32>
    %296 = arith.addf %287, %295 : vector<8x128xf32>
    %297 = vector.broadcast %22 : f32 to vector<8x128xf32>
    %298 = arith.mulf %97, %297 : vector<8x128xf32>
    %299 = vector.broadcast %52 : f32 to vector<8x128xf32>
    %300 = arith.addf %298, %299 : vector<8x128xf32>
    %cst_86 = arith.constant 0.000000e+00 : f32
    %301 = vector.broadcast %cst_86 : f32 to vector<8x128xf32>
    %302 = arith.maximumf %300, %301 : vector<8x128xf32>
    %303 = vector.broadcast %82 : f32 to vector<8x128xf32>
    %304 = arith.mulf %302, %303 : vector<8x128xf32>
    %305 = arith.addf %296, %304 : vector<8x128xf32>
    %306 = vector.broadcast %23 : f32 to vector<8x128xf32>
    %307 = arith.mulf %97, %306 : vector<8x128xf32>
    %308 = vector.broadcast %53 : f32 to vector<8x128xf32>
    %309 = arith.addf %307, %308 : vector<8x128xf32>
    %cst_87 = arith.constant 0.000000e+00 : f32
    %310 = vector.broadcast %cst_87 : f32 to vector<8x128xf32>
    %311 = arith.maximumf %309, %310 : vector<8x128xf32>
    %312 = vector.broadcast %83 : f32 to vector<8x128xf32>
    %313 = arith.mulf %311, %312 : vector<8x128xf32>
    %314 = arith.addf %305, %313 : vector<8x128xf32>
    %315 = vector.broadcast %24 : f32 to vector<8x128xf32>
    %316 = arith.mulf %97, %315 : vector<8x128xf32>
    %317 = vector.broadcast %54 : f32 to vector<8x128xf32>
    %318 = arith.addf %316, %317 : vector<8x128xf32>
    %cst_88 = arith.constant 0.000000e+00 : f32
    %319 = vector.broadcast %cst_88 : f32 to vector<8x128xf32>
    %320 = arith.maximumf %318, %319 : vector<8x128xf32>
    %321 = vector.broadcast %84 : f32 to vector<8x128xf32>
    %322 = arith.mulf %320, %321 : vector<8x128xf32>
    %323 = arith.addf %314, %322 : vector<8x128xf32>
    %324 = vector.broadcast %25 : f32 to vector<8x128xf32>
    %325 = arith.mulf %97, %324 : vector<8x128xf32>
    %326 = vector.broadcast %55 : f32 to vector<8x128xf32>
    %327 = arith.addf %325, %326 : vector<8x128xf32>
    %cst_89 = arith.constant 0.000000e+00 : f32
    %328 = vector.broadcast %cst_89 : f32 to vector<8x128xf32>
    %329 = arith.maximumf %327, %328 : vector<8x128xf32>
    %330 = vector.broadcast %85 : f32 to vector<8x128xf32>
    %331 = arith.mulf %329, %330 : vector<8x128xf32>
    %332 = arith.addf %323, %331 : vector<8x128xf32>
    %333 = vector.broadcast %26 : f32 to vector<8x128xf32>
    %334 = arith.mulf %97, %333 : vector<8x128xf32>
    %335 = vector.broadcast %56 : f32 to vector<8x128xf32>
    %336 = arith.addf %334, %335 : vector<8x128xf32>
    %cst_90 = arith.constant 0.000000e+00 : f32
    %337 = vector.broadcast %cst_90 : f32 to vector<8x128xf32>
    %338 = arith.maximumf %336, %337 : vector<8x128xf32>
    %339 = vector.broadcast %86 : f32 to vector<8x128xf32>
    %340 = arith.mulf %338, %339 : vector<8x128xf32>
    %341 = arith.addf %332, %340 : vector<8x128xf32>
    %342 = vector.broadcast %27 : f32 to vector<8x128xf32>
    %343 = arith.mulf %97, %342 : vector<8x128xf32>
    %344 = vector.broadcast %57 : f32 to vector<8x128xf32>
    %345 = arith.addf %343, %344 : vector<8x128xf32>
    %cst_91 = arith.constant 0.000000e+00 : f32
    %346 = vector.broadcast %cst_91 : f32 to vector<8x128xf32>
    %347 = arith.maximumf %345, %346 : vector<8x128xf32>
    %348 = vector.broadcast %87 : f32 to vector<8x128xf32>
    %349 = arith.mulf %347, %348 : vector<8x128xf32>
    %350 = arith.addf %341, %349 : vector<8x128xf32>
    %351 = vector.broadcast %28 : f32 to vector<8x128xf32>
    %352 = arith.mulf %97, %351 : vector<8x128xf32>
    %353 = vector.broadcast %58 : f32 to vector<8x128xf32>
    %354 = arith.addf %352, %353 : vector<8x128xf32>
    %cst_92 = arith.constant 0.000000e+00 : f32
    %355 = vector.broadcast %cst_92 : f32 to vector<8x128xf32>
    %356 = arith.maximumf %354, %355 : vector<8x128xf32>
    %357 = vector.broadcast %88 : f32 to vector<8x128xf32>
    %358 = arith.mulf %356, %357 : vector<8x128xf32>
    %359 = arith.addf %350, %358 : vector<8x128xf32>
    %360 = vector.broadcast %29 : f32 to vector<8x128xf32>
    %361 = arith.mulf %97, %360 : vector<8x128xf32>
    %362 = vector.broadcast %59 : f32 to vector<8x128xf32>
    %363 = arith.addf %361, %362 : vector<8x128xf32>
    %cst_93 = arith.constant 0.000000e+00 : f32
    %364 = vector.broadcast %cst_93 : f32 to vector<8x128xf32>
    %365 = arith.maximumf %363, %364 : vector<8x128xf32>
    %366 = vector.broadcast %89 : f32 to vector<8x128xf32>
    %367 = arith.mulf %365, %366 : vector<8x128xf32>
    %368 = arith.addf %359, %367 : vector<8x128xf32>
    %369 = vector.broadcast %90 : f32 to vector<8x128xf32>
    %370 = arith.addf %368, %369 : vector<8x128xf32>
    %c0_94 = arith.constant 0 : index
    %371 = arith.index_cast %94 : i32 to index
    %c0_95 = arith.constant 0 : index
    %372 = vector.load %arg6[%c0_94, %371, %c0_95] : memref<1x8x128xf32, #tpu.memory_space<vmem>>, vector<1x8x128xf32>
    %373 = vector.shape_cast %372 : vector<1x8x128xf32> to vector<8x128xf32>
    %374 = vector.shape_cast %370 : vector<8x128xf32> to vector<1x8x128xf32>
    tpu.vector_store %arg6[%c0_94, %371, %c0_95], %374 {strides = array<i32>} : memref<1x8x128xf32, #tpu.memory_space<vmem>>, vector<1x8x128xf32>,
    %c1_i32_96 = arith.constant 1 : i32
    return
  }
  func.func @transform_0(%arg0: i32) -> (i32, i32, i32) {
    %c0_i32 = arith.constant 0 : i32
    %c0_i32_0 = arith.constant 0 : i32
    %c0_i32_1 = arith.constant 0 : i32
    return %c0_i32, %arg0, %c0_i32_0 : i32, i32, i32
  }
  func.func @transform_1(%arg0: i32) -> i32 {
    %c0_i32 = arith.constant 0 : i32
    %c0_i32_0 = arith.constant 0 : i32
    return %c0_i32 : i32
  }
  func.func @transform_2(%arg0: i32) -> i32 {
    %c0_i32 = arith.constant 0 : i32
    %c0_i32_0 = arith.constant 0 : i32
    return %c0_i32 : i32
  }
  func.func @transform_3(%arg0: i32) -> i32 {
    %c0_i32 = arith.constant 0 : i32
    %c0_i32_0 = arith.constant 0 : i32
    return %c0_i32 : i32
  }
  func.func @transform_4(%arg0: i32) -> i32 {
    %c0_i32 = arith.constant 0 : i32
    %c0_i32_0 = arith.constant 0 : i32
    return %c0_i32 : i32
  }
  func.func @transform_5(%arg0: i32) -> (i32, i32, i32) {
    %c0_i32 = arith.constant 0 : i32
    %c0_i32_0 = arith.constant 0 : i32
    %c0_i32_1 = arith.constant 0 : i32
    return %c0_i32, %arg0, %c0_i32_0 : i32, i32, i32
  }
}

</mosaic_0001>

<bundles_post_ra>
// kernel: tpu_custom_call.1
= control target key start
LH: loop header
LB: loop body
LE: loop exit
PB: predicated region body
PF: predicated region fallthrough
CT: control target
= control target key end

     0   :  { %11 = vsyncpa [#allocation4], 0  ;;  %s957_s0 = inlined_call_operand.hbm [shape: f32[1,8,128], index: 0, kind: input, shape index: {}]   ;;  %s958_s1 = inlined_call_operand.vmem [shape: f32[30], index: 1, kind: input, shape index: {}]   ;;  %s959_s2 = inlined_call_operand.vmem [shape: f32[30], index: 2, kind: input, shape index: {}]   ;;  %s960_s3 = inlined_call_operand.vmem [shape: f32[30], index: 3, kind: input, shape index: {}]   ;;  %s961_s4 = inlined_call_operand.<no memory space> [shape: f32[1], index: 4, kind: input, shape index: {}]   ;;  %s962_s5 = inlined_call_operand.hbm [shape: f32[1,8,128], index: 5, kind: output, shape index: {}]  }
   0x1   :  { %12 = vsyncpa [#allocation6], 0 }
   0x2   :  { %13 = vsyncpa [#allocation9], 0  ;;  %s41_s20 = sshll.u32 %s959_s2, 4  ;;  %s42_s20 = int_to_ptr.vmem [resolvable:$true] %s41_s20 }
   0x3   :  { %14 = vsyncpa [#allocation5], 0  ;;  %s514_s21 = scalar_lea.vmem %s42_s20, 16  ;;  %p519_p1 = scmp.lt.s32.totalorder %s42_s20, %s42_s20 }
   0x4   :  { %p515_p0 = scmp.ne.s32.totalorder %s42_s20, %s514_s21  ;;  %p520_p2 = scmp.lt.s32.totalorder %s514_s21, %s514_s21 }
   0x6   :  { %p521_p3 = por %p520_p2, %p519_p1 }
   0x8   :  { %p522_p4 = pnand %p521_p3, %p515_p0 }
   0xa   :  { %525 = shalt.err (!%p522_p4)
}
   0xb   :  { %s602_s22 = smov [#allocation8]   ;;  %s603_s23 = smov [#allocation3]  }
   0xc   :  { %44 = dma.vmem_to_smem %s42_s20, 16, %s602_s22, [#allocation9]  }
   0xd   :  { %s21_s24 = sshll.u32 %s603_s23, 4  ;;  %s31_s27 = sshll.u32 %s958_s1, 4  ;;  %s22_s24 = int_to_ptr.vmem [resolvable:$true] %s21_s24  ;;  %s32_s27 = int_to_ptr.vmem [resolvable:$true] %s31_s27 }
   0xe   :  { %s526_s29 = scalar_lea.hbm %s957_s0, 128 }
   0xf   :  { %p527_p5 = scmp.ne.s32.totalorder %s957_s0, %s526_s29  ;;  %p530_p6 = scmp.lt.u32.totalorder %s526_s29, %s957_s0 }
  0x11   :  { %p532_p7 = pnand %p530_p6, %p527_p5 }
  0x13   :  { %535 = shalt.err (!%p532_p7)
}
  0x14   :  { %s536_s9 = scalar_lea.vmem %s22_s24, 128  ;;  %p541_p9 = scmp.lt.s32.totalorder %s22_s24, %s22_s24 }
  0x15   :  { %p537_p8 = scmp.ne.s32.totalorder %s22_s24, %s536_s9  ;;  %p542_p10 = scmp.lt.s32.totalorder %s536_s9, %s536_s9 }
  0x17   :  { %p543_p11 = por %p542_p10, %p541_p9 }
  0x19   :  { %p544_p12 = pnand %p543_p11, %p537_p8 }
  0x1b   :  { %547 = shalt.err (!%p544_p12)
}
  0x1c   :  { %24 = dma.hbm_to_vmem [thread:$0]  %s957_s0, 128, %s22_s24, [#allocation4]  }
  0x1d   :  { %s51_s13 = sshll.u32 %s960_s3, 4  ;;  %s548_s14 = scalar_lea.vmem %s32_s27, 16  ;;  %s52_s13 = int_to_ptr.vmem [resolvable:$true] %s51_s13 }
  0x1e   :  { %p549_p13 = scmp.ne.s32.totalorder %s32_s27, %s548_s14  ;;  %p553_p0 = scmp.lt.s32.totalorder %s32_s27, %s32_s27 }
  0x1f   :  { %p554_p1 = scmp.lt.s32.totalorder %s548_s14, %s548_s14 }
  0x21   :  { %p555_p2 = por %p554_p1, %p553_p0 }
  0x23   :  { %p556_p3 = pnand %p555_p2, %p549_p13 }
  0x25   :  { %559 = shalt.err (!%p556_p3)
}
  0x26   :  { %s604_s15 = smov [#allocation7]   ;;  %s560_s16 = scalar_lea.vmem %s52_s13, 16 }
  0x27   :  { %34 = dma.vmem_to_smem %s32_s27, 16, %s604_s15, [#allocation6]  }
  0x28   :  { %p561_p4 = scmp.ne.s32.totalorder %s52_s13, %s560_s16  ;;  %p565_p5 = scmp.lt.s32.totalorder %s52_s13, %s52_s13 }
  0x29   :  { %p566_p6 = scmp.lt.s32.totalorder %s560_s16, %s560_s16 }
  0x2b   :  { %p567_p7 = por %p566_p6, %p565_p5 }
  0x2d   :  { %p568_p8 = pnand %p567_p7, %p561_p4 }
  0x2f   :  { %571 = shalt.err (!%p568_p8)
}
  0x30   :  { %s605_s0 = smov [#allocation10]  }
  0x31   :  { %54 = dma.vmem_to_smem %s52_s13, 16, %s605_s0, [#allocation9]  }
  0x32   :  { %594 = dma.done.wait [#allocation4], 128  }
  0x33   :  { %595 = vsyncadd [#allocation4], 4294967168 }
  0x34   :  { %596 = dma.done.wait [#allocation6], 16  }
  0x35   :  { %597 = vsyncadd [#allocation6], 4294967280 }
  0x36   :  { %598 = dma.done.wait [#allocation9], 32  }
  0x37   :  { %599 = vsyncadd [#allocation9], 4294967264 }
  0x38   :  { %69 = sfence }
  0x39   :  { %s70_s3 = sld [smem:[#allocation7]]  ;;  %s422_s17 = sld [smem:[#allocation7 + $0x1]]  ;;  %v676_v0 = vld [vmem:[#allocation3] sm:$0xff] }
  0x3a   :  { %s423_s18 = sld [smem:[#allocation7 + $0x2]]  ;;  %s424_s19 = sld [smem:[#allocation7 + $0x3]] }
  0x3b   :  { %s658_s20 = sld [smem:[#allocation7 + $0x4]]  ;;  %s660_s21 = sld [smem:[#allocation8]] }
  0x3c   :  { %s662_s22 = sld [smem:[#allocation8 + $0x1]]  ;;  %s664_s23 = sld [smem:[#allocation7 + $0x5]] }
  0x3d   :  { %s666_s24 = sld [smem:[#allocation8 + $0x2]]  ;;  %s668_s25 = sld [smem:[#allocation8 + $0x3]] }
  0x3e   :  { %s670_s26 = sld [smem:[#allocation7 + $0x6]]  ;;  %s672_s27 = sld [smem:[#allocation8 + $0x4]] }
  0x3f   :  { %s674_s2 = sld [smem:[#allocation7 + $0x7]]  ;;  %v162_v1 = vstv %s70_s3  ;;  %v170_v2 = vstv %s422_s17  ;;  %s678_s28 = sld [smem:[#allocation7 + $0x8]] }
  0x40   :  { %s680_s29 = sld [smem:[#allocation7 + $0x9]]  ;;  %v178_v3 = vstv %s423_s18  ;;  %s682_s30 = sld [smem:[#allocation8 + $0x5]]  ;;  %v186_v4 = vstv %s424_s19  ;;  %v163_v5 = vmul.f32 %v162_v1, %v676_v0  ;;  %v171_v6 = vmul.f32 %v170_v2, %v676_v0 }
  0x41   :  { %s684_s6 = sld [smem:[#allocation8 + $0x6]]  ;;  %v194_v7 = vstv %s658_s20  ;;  %v164_v8 = vstv %s660_s21  ;;  %v179_v10 = vmul.f32 %v178_v3, %v676_v0  ;;  %s692_s7 = sld [smem:[#allocation7 + $0xa]]  ;;  %v187_v12 = vmul.f32 %v186_v4, %v676_v0 }
  0x42   :  { %v172_v9 = vstv %s662_s22  ;;  %s694_s8 = sld [smem:[#allocation8 + $0x7]]  ;;  %v202_v13 = vstv %s664_s23  ;;  %s699_s9 = sld [smem:[#allocation7 + $0xb]]  ;;  %v195_v15 = vmul.f32 %v194_v7, %v676_v0  ;;  %v165_v16 = vadd.f32 %v164_v8, %v163_v5 }
  0x43   :  { %v180_v11 = vstv %s666_s24  ;;  %s701_s1 = sld [smem:[#allocation7 + $0xc]]  ;;  %v188_v14 = vstv %s668_s25  ;;  %s705_s10 = sld [smem:[#allocation8 + $0x8]]  ;;  %v173_v17 = vadd.f32 %v172_v9, %v171_v6  ;;  %v203_v21 = vmul.f32 %v202_v13, %v676_v0 }
  0x44   :  { %s707_s11 = sld [smem:[#allocation8 + $0x9]]  ;;  %v196_v18 = vstv %s672_s27  ;;  %v210_v19 = vstv %s670_s26  ;;  %s711_s12 = sld [smem:[#allocation10]]  ;;  %v181_v20 = vadd.f32 %v180_v11, %v179_v10  ;;  %v189_v22 = vadd.f32 %v188_v14, %v187_v12 }
  0x45   :  { %s713_s13 = sld [smem:[#allocation10 + $0x1]]  ;;  %s716_s14 = sld [smem:[#allocation10 + $0x2]]  ;;  %v218_v23 = vstv %s674_s2  ;;  %v226_v24 = vstv %s678_s28  ;;  %v197_v26 = vadd.f32 %v196_v18, %v195_v15  ;;  %v211_v28 = vmul.f32 %v210_v19, %v676_v0 }
  0x46   :  { %s718_s15 = sld [smem:[#allocation10 + $0x3]]  ;;  %v234_v25 = vstv %s680_s29  ;;  %s723_s16 = sld [smem:[#allocation10 + $0x4]]  ;;  %v204_v27 = vstv %s682_s30  ;;  %v166_v29 = vmax.f32 %v165_v16, 0.0  ;;  %v174_v30 = vmax.f32 %v173_v17, 0.0 }
  0x47   :  { %s725_s0 = sld [smem:[#allocation10 + $0x5]]  ;;  %v212_v31 = vstv %s684_s6  ;;  %s732_s17 = sld [smem:[#allocation8 + $0xa]]  ;;  %v182_v32 = vmax.f32 %v181_v20, 0.0  ;;  %v219_v33 = vmul.f32 %v218_v23, %v676_v0  ;;  %v227_v34 = vmul.f32 %v226_v24, %v676_v0 }
  0x48   :  { %s729_s3 = sld [smem:[#allocation7 + $0xd]]  ;;  %s734_s18 = sld [smem:[#allocation10 + $0x6]]  ;;  %v235_v35 = vmul.f32 %v234_v25, %v676_v0  ;;  %v190_v36 = vmax.f32 %v189_v22, 0.0  ;;  %v205_v37 = vadd.f32 %v204_v27, %v203_v21  ;;  %v220_v38 = vstv %s694_s8 }
  0x49   :  { %s739_s19 = sld [smem:[#allocation7 + $0xe]]  ;;  %v242_v39 = vstv %s692_s7  ;;  %s743_s20 = sld [smem:[#allocation8 + $0xb]]  ;;  %v198_v42 = vmax.f32 %v197_v26, 0.0  ;;  %v213_v43 = vadd.f32 %v212_v31, %v211_v28  ;;  %v228_v50 = vstv %s705_s10 }
  0x4a   :  { %s745_s21 = sld [smem:[#allocation10 + $0x7]]  ;;  %v167_v40 = vstv %s711_s12  ;;  %s753_s23 = sld [smem:[#allocation8 + $0xc]]  ;;  %v250_v51 = vstv %s699_s9  ;;  %v206_v54 = vmax.f32 %v205_v37, 0.0  ;;  %v221_v55 = vadd.f32 %v220_v38, %v219_v33 }
  0x4b   :  { %v175_v41 = vstv %s713_s13  ;;  %s749_s22 = sld [smem:[#allocation7 + $0xf]]  ;;  %v168_v44 = vmul.f32 %v167_v40, %v166_v29  ;;  %v183_v46 = vstv %s716_s14  ;;  %s755_s24 = sld [smem:[#allocation10 + $0x8]]  ;;  %v236_v57 = vstv %s707_s11 }
  0x4c   :  { %v176_v45 = vmul.f32 %v175_v41, %v174_v30  ;;  %v191_v47 = vstv %s718_s15  ;;  %v184_v48 = vmul.f32 %v183_v46, %v182_v32  ;;  %v199_v49 = vstv %s723_s16  ;;  %s760_s25 = sld [smem:[#allocation7 + $0x10]]  ;;  %s762_s26 = sld [smem:[#allocation8 + $0xd]] }
  0x4d   :  { %v192_v53 = vmul.f32 %v191_v47, %v190_v36  ;;  %s764_s27 = sld [smem:[#allocation10 + $0x9]]  ;;  %v207_v56 = vstv %s725_s0  ;;  %v243_v58 = vmul.f32 %v242_v39, %v676_v0  ;;  %v258_v59 = vstv %s701_s1  ;;  %s772_s28 = sld [smem:[#allocation8 + $0xe]] }
  0x4e   :  { %v177_v52 = vadd.f32 %v176_v45, %v168_v44  ;;  %s770_s2 = sld [smem:[#allocation7 + $0x11]]  ;;  %v200_v61 = vmul.f32 %v199_v49, %v198_v42  ;;  %v214_v62 = vmax.f32 %v213_v43, 0.0  ;;  %v229_v63 = vadd.f32 %v228_v50, %v227_v34  ;;  %s774_s29 = sld [smem:[#allocation10 + $0xa]] }
  0x4f   :  { %v215_v1 = vstv %s734_s18  ;;  %v244_v2 = vstv %s732_s17  ;;  %v251_v3 = vmul.f32 %v250_v51, %v676_v0  ;;  %v266_v4 = vstv %s729_s3  ;;  %s780_s30 = sld [smem:[#allocation7 + $0x12]]  ;;  %s782_s6 = sld [smem:[#allocation8 + $0xf]] }
  0x50   :  { %v185_v60 = vadd.f32 %v184_v48, %v177_v52  ;;  %v208_v6 = vmul.f32 %v207_v56, %v206_v54  ;;  %v222_v7 = vmax.f32 %v221_v55, 0.0  ;;  %v237_v8 = vadd.f32 %v236_v57, %v235_v35  ;;  %s784_s7 = sld [smem:[#allocation10 + $0xb]]  ;;  %s792_s9 = sld [smem:[#allocation8 + $0x10]] }
  0x51   :  { %v223_v9 = vstv %s745_s21  ;;  %v252_v10 = vstv %s743_s20  ;;  %v259_v11 = vmul.f32 %v258_v59, %v676_v0  ;;  %v274_v12 = vstv %s739_s19  ;;  %s790_s8 = sld [smem:[#allocation7 + $0x13]]  ;;  %s794_s1 = sld [smem:[#allocation10 + $0xc]] }
  0x52   :  { %v193_v5 = vadd.f32 %v192_v53, %v185_v60  ;;  %v216_v14 = vmul.f32 %v215_v1, %v214_v62  ;;  %v230_v15 = vmax.f32 %v229_v63, 0.0  ;;  %v245_v16 = vadd.f32 %v244_v2, %v243_v58  ;;  %s800_s10 = sld [smem:[#allocation7 + $0x14]]  ;;  %s802_s11 = sld [smem:[#allocation8 + $0x11]] }
  0x53   :  { %v231_v17 = vstv %s755_s24  ;;  %v260_v18 = vstv %s753_s23  ;;  %v267_v19 = vmul.f32 %v266_v4, %v676_v0  ;;  %v282_v20 = vstv %s749_s22  ;;  %s804_s12 = sld [smem:[#allocation10 + $0xd]]  ;;  %s812_s14 = sld [smem:[#allocation8 + $0x12]] }
  0x54   :  { %v201_v13 = vadd.f32 %v200_v61, %v193_v5  ;;  %v224_v22 = vmul.f32 %v223_v9, %v222_v7  ;;  %v238_v23 = vmax.f32 %v237_v8, 0.0  ;;  %v253_v24 = vadd.f32 %v252_v10, %v251_v3  ;;  %s810_s13 = sld [smem:[#allocation7 + $0x15]]  ;;  %s814_s15 = sld [smem:[#allocation10 + $0xe]] }
  0x55   :  { %v239_v25 = vstv %s764_s27  ;;  %v268_v26 = vstv %s762_s26  ;;  %v275_v27 = vmul.f32 %v274_v12, %v676_v0  ;;  %v290_v28 = vstv %s760_s25  ;;  %s820_s16 = sld [smem:[#allocation7 + $0x16]]  ;;  %s822_s0 = sld [smem:[#allocation8 + $0x13]] }
  0x56   :  { %v209_v21 = vadd.f32 %v208_v6, %v201_v13  ;;  %v232_v30 = vmul.f32 %v231_v17, %v230_v15  ;;  %v246_v31 = vmax.f32 %v245_v16, 0.0  ;;  %v261_v32 = vadd.f32 %v260_v18, %v259_v11  ;;  %s824_s3 = sld [smem:[#allocation10 + $0xf]]  ;;  %s832_s18 = sld [smem:[#allocation8 + $0x14]] }
  0x57   :  { %v247_v33 = vstv %s774_s29  ;;  %v276_v34 = vstv %s772_s28  ;;  %v283_v35 = vmul.f32 %v282_v20, %v676_v0  ;;  %v298_v36 = vstv %s770_s2  ;;  %s830_s17 = sld [smem:[#allocation7 + $0x17]]  ;;  %s834_s19 = sld [smem:[#allocation10 + $0x10]] }
  0x58   :  { %v217_v29 = vadd.f32 %v216_v14, %v209_v21  ;;  %v240_v38 = vmul.f32 %v239_v25, %v238_v23  ;;  %v254_v39 = vmax.f32 %v253_v24, 0.0  ;;  %v269_v40 = vadd.f32 %v268_v26, %v267_v19  ;;  %s840_s20 = sld [smem:[#allocation7 + $0x18]]  ;;  %s842_s21 = sld [smem:[#allocation8 + $0x15]] }
  0x59   :  { %v255_v41 = vstv %s784_s7  ;;  %v284_v42 = vstv %s782_s6  ;;  %v291_v43 = vmul.f32 %v290_v28, %v676_v0  ;;  %v306_v44 = vstv %s780_s30  ;;  %s844_s22 = sld [smem:[#allocation10 + $0x11]]  ;;  %s852_s24 = sld [smem:[#allocation8 + $0x16]] }
  0x5a   :  { %v225_v37 = vadd.f32 %v224_v22, %v217_v29  ;;  %v248_v46 = vmul.f32 %v247_v33, %v246_v31  ;;  %v262_v47 = vmax.f32 %v261_v32, 0.0  ;;  %v277_v48 = vadd.f32 %v276_v34, %v275_v27  ;;  %s850_s23 = sld [smem:[#allocation7 + $0x19]]  ;;  %s854_s25 = sld [smem:[#allocation10 + $0x12]] }
  0x5b   :  { %v263_v49 = vstv %s794_s1  ;;  %v292_v50 = vstv %s792_s9  ;;  %v299_v51 = vmul.f32 %v298_v36, %v676_v0  ;;  %v314_v52 = vstv %s790_s8  ;;  %s860_s26 = sld [smem:[#allocation7 + $0x1a]]  ;;  %s862_s27 = sld [smem:[#allocation8 + $0x17]] }
  0x5c   :  { %v233_v45 = vadd.f32 %v232_v30, %v225_v37  ;;  %v256_v54 = vmul.f32 %v255_v41, %v254_v39  ;;  %v270_v55 = vmax.f32 %v269_v40, 0.0  ;;  %v285_v56 = vadd.f32 %v284_v42, %v283_v35  ;;  %s864_s2 = sld [smem:[#allocation10 + $0x13]]  ;;  %s872_s29 = sld [smem:[#allocation8 + $0x18]] }
  0x5d   :  { %v271_v57 = vstv %s804_s12  ;;  %v300_v58 = vstv %s802_s11  ;;  %v307_v59 = vmul.f32 %v306_v44, %v676_v0  ;;  %v322_v60 = vstv %s800_s10  ;;  %s870_s28 = sld [smem:[#allocation7 + $0x1b]]  ;;  %s874_s30 = sld [smem:[#allocation10 + $0x14]] }
  0x5e   :  { %v241_v53 = vadd.f32 %v240_v38, %v233_v45  ;;  %v264_v62 = vmul.f32 %v263_v49, %v262_v47  ;;  %v278_v63 = vmax.f32 %v277_v48, 0.0  ;;  %v293_v1 = vadd.f32 %v292_v50, %v291_v43  ;;  %s880_s6 = sld [smem:[#allocation7 + $0x1c]]  ;;  %s882_s7 = sld [smem:[#allocation8 + $0x19]] }
  0x5f   :  { %v279_v2 = vstv %s814_s15  ;;  %v308_v3 = vstv %s812_s14  ;;  %v315_v4 = vmul.f32 %v314_v52, %v676_v0  ;;  %v330_v5 = vstv %s810_s13  ;;  %s884_s8 = sld [smem:[#allocation10 + $0x15]]  ;;  %s892_s1 = sld [smem:[#allocation8 + $0x1a]] }
  0x60   :  { %v249_v61 = vadd.f32 %v248_v46, %v241_v53  ;;  %v272_v7 = vmul.f32 %v271_v57, %v270_v55  ;;  %v286_v8 = vmax.f32 %v285_v56, 0.0  ;;  %v301_v9 = vadd.f32 %v300_v58, %v299_v51  ;;  %s890_s9 = sld [smem:[#allocation7 + $0x1d]]  ;;  %s894_s10 = sld [smem:[#allocation10 + $0x16]] }
  0x61   :  { %v287_v10 = vstv %s824_s3  ;;  %v316_v11 = vstv %s822_s0  ;;  %v323_v12 = vmul.f32 %v322_v60, %v676_v0  ;;  %v338_v13 = vstv %s820_s16  ;;  %s900_s11 = sld [smem:[#allocation8 + $0x1b]]  ;;  %s902_s12 = sld [smem:[#allocation10 + $0x17]] }
  0x62   :  { %v257_v6 = vadd.f32 %v256_v54, %v249_v61  ;;  %v280_v15 = vmul.f32 %v279_v2, %v278_v63  ;;  %v294_v16 = vmax.f32 %v293_v1, 0.0  ;;  %v309_v17 = vadd.f32 %v308_v3, %v307_v59  ;;  %s908_s13 = sld [smem:[#allocation8 + $0x1c]]  ;;  %s910_s14 = sld [smem:[#allocation10 + $0x18]] }
  0x63   :  { %v295_v18 = vstv %s834_s19  ;;  %v324_v19 = vstv %s832_s18  ;;  %v331_v20 = vmul.f32 %v330_v5, %v676_v0  ;;  %v346_v21 = vstv %s830_s17  ;;  %s916_s15 = sld [smem:[#allocation8 + $0x1d]]  ;;  %s918_s16 = sld [smem:[#allocation10 + $0x19]] }
  0x64   :  { %v265_v14 = vadd.f32 %v264_v62, %v257_v6  ;;  %v288_v23 = vmul.f32 %v287_v10, %v286_v8  ;;  %v302_v24 = vmax.f32 %v301_v9, 0.0  ;;  %v317_v25 = vadd.f32 %v316_v11, %v315_v4  ;;  %s924_s0 = sld [smem:[#allocation10 + $0x1a]]  ;;  %s930_s3 = sld [smem:[#allocation10 + $0x1b]] }
  0x65   :  { %v303_v26 = vstv %s844_s22  ;;  %v332_v27 = vstv %s842_s21  ;;  %v339_v28 = vmul.f32 %v338_v13, %v676_v0  ;;  %v354_v29 = vstv %s840_s20  ;;  %s507_s17 = sld [smem:[#allocation10 + $0x1c]]  ;;  %s508_s18 = sld [smem:[#allocation10 + $0x1d]] }
  0x66   :  { %v273_v22 = vadd.f32 %v272_v7, %v265_v14  ;;  %v296_v31 = vmul.f32 %v295_v18, %v294_v16  ;;  %v310_v32 = vmax.f32 %v309_v17, 0.0  ;;  %v325_v33 = vadd.f32 %v324_v19, %v323_v12  ;;  %s606_s21 = smov [#allocation11]  }
  0x67   :  { %v311_v34 = vstv %s854_s25  ;;  %v340_v35 = vstv %s852_s24  ;;  %v347_v36 = vmul.f32 %v346_v21, %v676_v0  ;;  %v362_v37 = vstv %s850_s23  ;;  %s411_s22 = sshll.u32 %s606_s21, 4  ;;  %s412_s22 = int_to_ptr.vmem [resolvable:$true] %s411_s22 }
  0x68   :  { %v281_v30 = vadd.f32 %v280_v15, %v273_v22  ;;  %v304_v39 = vmul.f32 %v303_v26, %v302_v24  ;;  %v318_v40 = vmax.f32 %v317_v25, 0.0  ;;  %v333_v41 = vadd.f32 %v332_v27, %v331_v20  ;;  %s572_s23 = scalar_lea.vmem %s412_s22, 128  ;;  %p577_p10 = scmp.lt.s32.totalorder %s412_s22, %s412_s22 }
  0x69   :  { %v319_v42 = vstv %s864_s2  ;;  %v348_v43 = vstv %s862_s27  ;;  %v355_v44 = vmul.f32 %v354_v29, %v676_v0  ;;  %v370_v45 = vstv %s860_s26  ;;  %p573_p9 = scmp.ne.s32.totalorder %s412_s22, %s572_s23  ;;  %p578_p11 = scmp.lt.s32.totalorder %s572_s23, %s572_s23 }
  0x6a   :  { %v289_v38 = vadd.f32 %v288_v23, %v281_v30  ;;  %v312_v47 = vmul.f32 %v311_v34, %v310_v32  ;;  %v326_v48 = vmax.f32 %v325_v33, 0.0  ;;  %v341_v49 = vadd.f32 %v340_v35, %v339_v28 }
  0x6b   :  { %v327_v50 = vstv %s874_s30  ;;  %v356_v51 = vstv %s872_s29  ;;  %v363_v52 = vmul.f32 %v362_v37, %v676_v0  ;;  %v378_v53 = vstv %s870_s28  ;;  %p579_p12 = por %p578_p11, %p577_p10 }
  0x6c   :  { %v297_v46 = vadd.f32 %v296_v31, %v289_v38  ;;  %v320_v55 = vmul.f32 %v319_v42, %v318_v40  ;;  %v334_v56 = vmax.f32 %v333_v41, 0.0  ;;  %v349_v57 = vadd.f32 %v348_v43, %v347_v36 }
  0x6d   :  { %v335_v58 = vstv %s884_s8  ;;  %v364_v59 = vstv %s882_s7  ;;  %v371_v60 = vmul.f32 %v370_v45, %v676_v0  ;;  %v386_v61 = vstv %s880_s6  ;;  %p580_p13 = pnand %p579_p12, %p573_p9 }
  0x6e   :  { %v305_v54 = vadd.f32 %v304_v39, %v297_v46  ;;  %v328_v63 = vmul.f32 %v327_v50, %v326_v48  ;;  %v342_v1 = vmax.f32 %v341_v49, 0.0  ;;  %v357_v2 = vadd.f32 %v356_v51, %v355_v44 }
  0x6f   :  { %v343_v3 = vstv %s894_s10  ;;  %v372_v4 = vstv %s892_s1  ;;  %v379_v5 = vmul.f32 %v378_v53, %v676_v0  ;;  %v394_v6 = vstv %s890_s9 }
  0x70   :  { %v313_v62 = vadd.f32 %v312_v47, %v305_v54  ;;  %v336_v8 = vmul.f32 %v335_v58, %v334_v56  ;;  %v350_v9 = vmax.f32 %v349_v57, 0.0  ;;  %v365_v10 = vadd.f32 %v364_v59, %v363_v52 }
  0x71   :  { %v351_v11 = vstv %s902_s12  ;;  %v380_v12 = vstv %s900_s11  ;;  %v387_v13 = vmul.f32 %v386_v61, %v676_v0  ;;  %v344_v15 = vmul.f32 %v343_v3, %v342_v1 }
  0x72   :  { %v321_v7 = vadd.f32 %v320_v55, %v313_v62  ;;  %v358_v16 = vmax.f32 %v357_v2, 0.0  ;;  %v373_v17 = vadd.f32 %v372_v4, %v371_v60  ;;  %v359_v18 = vstv %s910_s14 }
  0x73   :  { %v388_v19 = vstv %s908_s13  ;;  %v395_v20 = vmul.f32 %v394_v6, %v676_v0  ;;  %v352_v22 = vmul.f32 %v351_v11, %v350_v9  ;;  %v366_v23 = vmax.f32 %v365_v10, 0.0 }
  0x74   :  { %v329_v14 = vadd.f32 %v328_v63, %v321_v7  ;;  %v381_v24 = vadd.f32 %v380_v12, %v379_v5  ;;  %v367_v25 = vstv %s918_s16  ;;  %v396_v26 = vstv %s916_s15 }
  0x75   :  { %v360_v28 = vmul.f32 %v359_v18, %v358_v16  ;;  %v374_v29 = vmax.f32 %v373_v17, 0.0  ;;  %v389_v30 = vadd.f32 %v388_v19, %v387_v13  ;;  %v375_v31 = vstv %s924_s0 }
  0x76   :  { %v337_v21 = vadd.f32 %v336_v8, %v329_v14  ;;  %v368_v33 = vmul.f32 %v367_v25, %v366_v23  ;;  %v382_v34 = vmax.f32 %v381_v24, 0.0  ;;  %v397_v35 = vadd.f32 %v396_v26, %v395_v20 }
  0x77   :  { %v383_v36 = vstv %s930_s3  ;;  %v376_v0 = vmul.f32 %v375_v31, %v374_v29  ;;  %v390_v38 = vmax.f32 %v389_v30, 0.0  ;;  %v391_v39 = vstv %s507_s17 }
  0x78   :  { %v345_v27 = vadd.f32 %v344_v15, %v337_v21  ;;  %v384_v41 = vmul.f32 %v383_v36, %v382_v34  ;;  %v398_v42 = vmax.f32 %v397_v35, 0.0  ;;  %v399_v43 = vstv %s508_s18 }
  0x79   :  { %v392_v45 = vmul.f32 %v391_v39, %v390_v38  ;;  %v402_v49 = vstv %s961_s4 }
  0x7a   :  { %v353_v32 = vadd.f32 %v352_v22, %v345_v27  ;;  %v400_v47 = vmul.f32 %v399_v43, %v398_v42 }
  0x7c   :  { %v361_v37 = vadd.f32 %v360_v28, %v353_v32 }
  0x7e   :  { %v369_v40 = vadd.f32 %v368_v33, %v361_v37 }
  0x80   :  { %v377_v44 = vadd.f32 %v376_v0, %v369_v40 }
  0x82   :  { %v385_v46 = vadd.f32 %v384_v41, %v377_v44 }
  0x84   :  { %v393_v48 = vadd.f32 %v392_v45, %v385_v46 }
  0x86   :  { %v401_v50 = vadd.f32 %v400_v47, %v393_v48 }
  0x88   :  { %v403_v51 = vadd.f32 %v402_v49, %v401_v50 }
  0x8a   :  { %404 = vst [vmem:[#allocation11] sm:$0xff] %v403_v51 }
  0x8b   :  { %583 = shalt.err (!%p580_p13)
}
  0x8c   :  { %s584_s26 = scalar_lea.hbm %s962_s5, 128 }
  0x8d   :  { %p585_p0 = scmp.ne.s32.totalorder %s962_s5, %s584_s26  ;;  %p588_p1 = scmp.lt.u32.totalorder %s584_s26, %s962_s5 }
  0x8f   :  { %p590_p2 = pnand %p588_p1, %p585_p0 }
  0x91   :  { %593 = shalt.err (!%p590_p2)
}
  0x92   :  { %414 = dma.vmem_to_hbm [thread:$0]  %s412_s22, 128, %s962_s5, [#allocation5]  }
  0x93   :  { %600 = dma.done.wait [#allocation5], 128  }
  0x94   :  { %601 = vsyncadd [#allocation5], 4294967168 }
  0x95   :  { %418 = vsyncpa [#allocation4], 1 }
  0x96   :  { %419 = vsyncpa [#allocation5], 1 }
  0x97   :  { %420 = vsyncpa [#allocation6], 1 }
  0x98   :  { %421 = vsyncpa [#allocation9], 1 }

</bundles_post_ra>
